<compile_context>
chip_gen: v7x
topology: tpu7x:2x2x1
jax: 0.10.0
libtpu: 0.0.40
codegen_flags: <defaults>
</compile_context>

<pallas_src>
import jax
import jax.numpy as jnp
from jax.experimental import pallas as pl
from jax.experimental.pallas import tpu as pltpu


# ----------------------------------------------------------------------------
# In-kernel GAT body (shared by both fused kernels)
# ----------------------------------------------------------------------------
def _gat_body(x_all, w_aug, n, d):
    """x_all: (n+1, d) = n neighbor rows then the self row (last).
    w_aug: (d, d+2) = [W | W@a1 | W@a2].  Returns ELU-aggregated (1, d)."""
    haug = jnp.dot(x_all, w_aug, preferred_element_type=jnp.float32)  # (n+1, d+2)
    h_n = haug[:n, :d]                        # neighbor projections  (n, d)
    e_s = haug[n:n + 1, d:d + 1]              # x_self . (W a1)       (1, 1)
    e_n = haug[:n, d + 1:d + 2]               # x_j    . (W a2)       (n, 1)
    e = e_s + e_n
    e = jnp.where(e > 0.0, e, 0.2 * e)        # LeakyReLU(0.2)
    p = jnp.exp(e - jnp.max(e, axis=0, keepdims=True))
    att = p * pl.reciprocal(jnp.sum(p, axis=0, keepdims=True), approx=True)
    hp = jnp.sum(att * h_n, axis=0, keepdims=True)                    # (1, d)
    # ELU
    return jnp.where(hp > 0.0, hp, jnp.exp(jnp.minimum(hp, 0.0)) - 1.0)


# ----------------------------------------------------------------------------
# Fused kernels: GAT(s) + gated fusion epilogue, BT nodes per grid step
# ----------------------------------------------------------------------------
def fused3_kernel(xn_ref, xi_ref, wn_ref, wi_ref, c1_ref, bias_ref, out_ref):
    """User branch with item features (two GATs + 3-way gated fusion).

    xn_ref  : (BT, Nn+1, D)  [neighbors..., self]
    xi_ref  : (BT, Ni+1, D)  [items...,     self]
    wn_ref  : (D, D+2)       augmented weight of GAT_neighbor
    wi_ref  : (D, D+2)       augmented weight of GAT_item
    c1_ref  : (1, D)         first half of gate vector c
    bias_ref: (1, 3)         [c2.rel_n, c2.rel_i, c2.rel_s]
    out_ref : (BT, D)
    """
    bt, d = out_ref.shape
    nn = xn_ref.shape[1] - 1
    ni = xi_ref.shape[1] - 1
    wn = wn_ref[...]
    wi = wi_ref[...]
    c1 = c1_ref[...]
    bias = bias_ref[...]
    for t in range(bt):                      # static unroll over the node tile
        xall_n = xn_ref[t]                   # (nn+1, d)
        xall_i = xi_ref[t]                   # (ni+1, d)
        x_self = xall_n[nn:nn + 1, :]        # (1, d)
        f_n = _gat_body(xall_n, wn, nn, d)
        f_i = _gat_body(xall_i, wi, ni, d)
        # gating logits: e_k = c1 . f_k + c2 . relation_k (bias precomputed)
        e_n = jnp.sum(c1 * f_n, axis=-1, keepdims=True) + bias[:, 0:1]
        e_i = jnp.sum(c1 * f_i, axis=-1, keepdims=True) + bias[:, 1:2]
        e_s = jnp.sum(c1 * x_self, axis=-1, keepdims=True) + bias[:, 2:3]
        m = jnp.maximum(jnp.maximum(e_n, e_i), e_s)
        p_n = jnp.exp(e_n - m)
        p_i = jnp.exp(e_i - m)
        p_s = jnp.exp(e_s - m)
        inv = pl.reciprocal(p_n + p_i + p_s, approx=True)
        out_t = (p_s * inv) * x_self + (p_n * inv) * f_n + (p_i * inv) * f_i
        out_ref[pl.ds(t, 1), :] = out_t


def fused2_kernel(xn_ref, wn_ref, c1_ref, bias_ref, out_ref):
    """One GAT + 2-way gated fusion (user-without-items and item branches).

    xn_ref  : (BT, Nn+1, D)   wn_ref: (D, D+2)
    c1_ref  : (1, D)          bias_ref: (1, 2) = [c2.rel_n, c2.rel_s]
    out_ref : (BT, D)
    """
    bt, d = out_ref.shape
    nn = xn_ref.shape[1] - 1
    wn = wn_ref[...]
    c1 = c1_ref[...]
    bias = bias_ref[...]
    for t in range(bt):
        xall_n = xn_ref[t]
        x_self = xall_n[nn:nn + 1, :]
        f_n = _gat_body(xall_n, wn, nn, d)
        e_n = jnp.sum(c1 * f_n, axis=-1, keepdims=True) + bias[:, 0:1]
        e_s = jnp.sum(c1 * x_self, axis=-1, keepdims=True) + bias[:, 1:2]
        m = jnp.maximum(e_n, e_s)
        p_n = jnp.exp(e_n - m)
        p_s = jnp.exp(e_s - m)
        inv = pl.reciprocal(p_n + p_s, approx=True)
        out_ref[pl.ds(t, 1), :] = (p_s * inv) * x_self + (p_n * inv) * f_n


# ----------------------------------------------------------------------------
# pallas_call wrappers
# ----------------------------------------------------------------------------
def _pick_bt(B):
    return 8 if B % 8 == 0 else B        # node-tile size per grid step


def _call_fused3(xall_n, xall_i, wn_aug, wi_aug, c1, bias):
    B, n1, D = xall_n.shape
    ni1 = xall_i.shape[1]
    BT = _pick_bt(B)
    return pl.pallas_call(
        fused3_kernel,
        out_shape=jax.ShapeDtypeStruct((B, D), jnp.float32),
        grid=(B // BT,),
        in_specs=[
            pl.BlockSpec((BT, n1, D), lambda b: (b, 0, 0)),
            pl.BlockSpec((BT, ni1, D), lambda b: (b, 0, 0)),
            pl.BlockSpec(wn_aug.shape, lambda b: (0, 0)),   # resident params
            pl.BlockSpec(wi_aug.shape, lambda b: (0, 0)),
            pl.BlockSpec(c1.shape, lambda b: (0, 0)),
            pl.BlockSpec(bias.shape, lambda b: (0, 0)),
        ],
        out_specs=pl.BlockSpec((BT, D), lambda b: (b, 0)),
        compiler_params=pltpu.CompilerParams(
            dimension_semantics=("parallel",)),
    )(xall_n, xall_i, wn_aug, wi_aug, c1, bias)


def _call_fused2(xall_n, w_aug, c1, bias):
    B, n1, D = xall_n.shape
    BT = _pick_bt(B)
    return pl.pallas_call(
        fused2_kernel,
        out_shape=jax.ShapeDtypeStruct((B, D), jnp.float32),
        grid=(B // BT,),
        in_specs=[
            pl.BlockSpec((BT, n1, D), lambda b: (b, 0, 0)),
            pl.BlockSpec(w_aug.shape, lambda b: (0, 0)),
            pl.BlockSpec(c1.shape, lambda b: (0, 0)),
            pl.BlockSpec(bias.shape, lambda b: (0, 0)),
        ],
        out_specs=pl.BlockSpec((BT, D), lambda b: (b, 0)),
        compiler_params=pltpu.CompilerParams(
            dimension_semantics=("parallel",)),
    )(xall_n, w_aug, c1, bias)


# ----------------------------------------------------------------------------
# Parameter prep + forward (branching glue)
# ----------------------------------------------------------------------------
_HI = jax.lax.Precision.HIGHEST


def _gat_aug_weight(W, a):
    """W_aug = [W | W@a1 | W@a2] so one matmul emits h and the attn logits."""
    D = W.shape[0]
    wa1 = jnp.dot(W, a[:D], precision=_HI)
    wa2 = jnp.dot(W, a[D:], precision=_HI)
    return jnp.concatenate([W, wa1[:, None], wa2[:, None]], axis=1).astype(jnp.float32)


def _stack_self(feat, feat_self):
    """(B, N, D), (B, D) -> (B, N+1, D) with the self row last."""
    return jnp.concatenate([feat, feat_self[:, None, :]], axis=1)


def init_params(key, embed_size):
    D = embed_size
    ks = jax.random.split(key, 13)

    def xavier(k, shape):
        bound = (6.0 / sum(shape)) ** 0.5
        return jax.random.uniform(k, shape, jnp.float32, -bound, bound)

    return {
        "Wn": xavier(ks[0], (D, D)), "an": xavier(ks[1], (2 * D,)),
        "Wi": xavier(ks[2], (D, D)), "ai": xavier(ks[3], (2 * D,)),
        "Win": xavier(ks[4], (D, D)), "ain": xavier(ks[5], (2 * D,)),
        "relation_neighbor": jax.random.normal(ks[6], (D,), jnp.float32),
        "relation_item": jax.random.normal(ks[7], (D,), jnp.float32),
        "relation_self": jax.random.normal(ks[8], (D,), jnp.float32),
        "c": jax.random.normal(ks[9], (2 * D,), jnp.float32),
        "relation_item_neighbor": jax.random.normal(ks[10], (D,), jnp.float32),
        "relation_item_self": jax.random.normal(ks[11], (D,), jnp.float32),
        "d": jax.random.normal(ks[12], (2 * D,), jnp.float32),
    }


def fedhe_forward(params, feature_self, feature_neighbor, feature_item, is_item):
    """Mirrors model.forward.

    Accepts a single node (feature_self (D,), feature_neighbor (N, D)) or a
    batch of nodes ((B, D), (B, N, D)); feature_item=None <=> the PyTorch
    `type(feature_item) != torch.Tensor` branch.  One pallas_call per call.
    """
    squeeze = feature_self.ndim == 1
    if squeeze:
        feature_self = feature_self[None]
        feature_neighbor = feature_neighbor[None]
        if feature_item is not None:
            feature_item = feature_item[None]

    D = feature_self.shape[-1]
    fs = feature_self.astype(jnp.float32)
    fn = feature_neighbor.astype(jnp.float32)

    if not is_item:
        c1 = params["c"][:D].reshape(1, D).astype(jnp.float32)
        c2 = params["c"][D:]
        if feature_item is not None:
            fi = feature_item.astype(jnp.float32)
            wn_aug = _gat_aug_weight(params["Wn"], params["an"])
            wi_aug = _gat_aug_weight(params["Wi"], params["ai"])
            bias = jnp.stack([
                jnp.dot(c2, params["relation_neighbor"], precision=_HI),
                jnp.dot(c2, params["relation_item"], precision=_HI),
                jnp.dot(c2, params["relation_self"], precision=_HI),
            ]).reshape(1, 3).astype(jnp.float32)
            out = _call_fused3(_stack_self(fn, fs), _stack_self(fi, fs),
                               wn_aug, wi_aug, c1, bias)
        else:
            wn_aug = _gat_aug_weight(params["Wn"], params["an"])
            bias = jnp.stack([
                jnp.dot(c2, params["relation_neighbor"], precision=_HI),
                jnp.dot(c2, params["relation_self"], precision=_HI),
            ]).reshape(1, 2).astype(jnp.float32)
            out = _call_fused2(_stack_self(fn, fs), wn_aug, c1, bias)
    else:
        d1 = params["d"][:D].reshape(1, D).astype(jnp.float32)
        d2 = params["d"][D:]
        wn_aug = _gat_aug_weight(params["Win"], params["ain"])
        bias = jnp.stack([
            jnp.dot(d2, params["relation_item_neighbor"], precision=_HI),
            jnp.dot(d2, params["relation_item_self"], precision=_HI),
        ]).reshape(1, 2).astype(jnp.float32)
        out = _call_fused2(_stack_self(fn, fs), wn_aug, d1, bias)

    return out[0] if squeeze else out


# ----------------------------------------------------------------------------
# Pure-JAX reference (for correctness checking only)
# ----------------------------------------------------------------------------
def _gat_ref(fs, fn, W, a):
    D = W.shape[0]
    h_s = jnp.dot(fs, W, precision=_HI)
    h_n = jnp.dot(fn, W, precision=_HI)
    e = jnp.dot(h_s, a[:D], precision=_HI) + jnp.dot(h_n, a[D:], precision=_HI)
    e = jnp.where(e > 0, e, 0.2 * e)
    att = jax.nn.softmax(e)
    hp = jnp.dot(att, h_n, precision=_HI)
    return jnp.where(hp > 0, hp, jnp.exp(hp) - 1.0)


def fedhe_forward_ref(params, fs, fn, fi, is_item):
    if not is_item:
        c = params["c"]
        if fi is not None:
            f_n = _gat_ref(fs, fn, params["Wn"], params["an"])
            f_i = _gat_ref(fs, fi, params["Wi"], params["ai"])
            e_n = jnp.dot(c, jnp.concatenate([f_n, params["relation_neighbor"]]), precision=_HI)
            e_i = jnp.dot(c, jnp.concatenate([f_i, params["relation_item"]]), precision=_HI)
            e_s = jnp.dot(c, jnp.concatenate([fs, params["relation_self"]]), precision=_HI)
            r = jax.nn.softmax(jnp.stack([e_n, e_i, e_s]))
            return r[2] * fs + r[0] * f_n + r[1] * f_i
        f_n = _gat_ref(fs, fn, params["Wn"], params["an"])
        e_n = jnp.dot(c, jnp.concatenate([f_n, params["relation_neighbor"]]), precision=_HI)
        e_s = jnp.dot(c, jnp.concatenate([fs, params["relation_self"]]), precision=_HI)
        r = jax.nn.softmax(jnp.stack([e_n, e_s]))
        return r[1] * fs + r[0] * f_n
    dd = params["d"]
    f_n = _gat_ref(fs, fn, params["Win"], params["ain"])
    e_n = jnp.dot(dd, jnp.concatenate([f_n, params["relation_item_neighbor"]]), precision=_HI)
    e_s = jnp.dot(dd, jnp.concatenate([fs, params["relation_item_self"]]), precision=_HI)
    r = jax.nn.softmax(jnp.stack([e_n, e_s]))
    return r[1] * fs + r[0] * f_n


# ----------------------------------------------------------------------------
if __name__ == "__main__":
    D = 32         # embed_size
    N_NEIGH = 8    # user neighbors
    N_ITEM = 16    # interacted items
    B = 16         # batch of user nodes for the batched call

    root = jax.random.PRNGKey(0)
    kp, k1, k2, k3, k4, k5, k6 = jax.random.split(root, 7)
    params = init_params(kp, D)

    fwd = jax.jit(fedhe_forward, static_argnums=(4,))

    # ---- single node, faithful to model.forward (one fused pallas_call) ----
    fs = jax.random.normal(k1, (D,), jnp.float32)
    fn = jax.random.normal(k2, (N_NEIGH, D), jnp.float32)
    fi = jax.random.normal(k3, (N_ITEM, D), jnp.float32)

    user_emb = fwd(params, fs, fn, fi, False)        # 3-way fusion
    user_emb_ni = fwd(params, fs, fn, None, False)   # 2-way fusion
    item_emb = fwd(params, fs, fn, None, True)       # item branch
    jax.block_until_ready((user_emb, user_emb_ni, item_emb))

    for got, args in ((user_emb, (fs, fn, fi, False)),
                      (user_emb_ni, (fs, fn, None, False)),
                      (item_emb, (fs, fn, None, True))):
        ref = fedhe_forward_ref(params, *args)
        assert got.shape == (D,)
        err = float(jnp.max(jnp.abs(got - ref)))
        assert err < 5e-2, f"single-node mismatch: {err}"

    # ---- batched user branch: B nodes in ONE pallas_call (grid over tiles) ----
    fs_b = jax.random.normal(k4, (B, D), jnp.float32)
    fn_b = jax.random.normal(k5, (B, N_NEIGH, D), jnp.float32)
    fi_b = jax.random.normal(k6, (B, N_ITEM, D), jnp.float32)
    user_b = fwd(params, fs_b, fn_b, fi_b, False)
    jax.block_until_ready(user_b)
    ref_b = jax.vmap(lambda a, b, c: fedhe_forward_ref(params, a, b, c, False))(
        fs_b, fn_b, fi_b)
    assert user_b.shape == (B, D)
    err_b = float(jnp.max(jnp.abs(user_b - ref_b)))
    assert err_b < 5e-2, f"batched mismatch: {err_b}"

    print("KERNEL_OK")
</pallas_src>

<mosaic_0001>
module attributes {stable_mosaic.version = 11 : i64} {
  func.func @fused3_kernel(%arg0: i32, %arg1: memref<1x9x32xf32, #tpu.memory_space<vmem>>, %arg2: memref<1x17x32xf32, #tpu.memory_space<vmem>>, %arg3: memref<32x34xf32, #tpu.memory_space<vmem>>, %arg4: memref<32x34xf32, #tpu.memory_space<vmem>>, %arg5: memref<1x32xf32, #tpu.memory_space<vmem>>, %arg6: memref<1x3xf32, #tpu.memory_space<vmem>>, %arg7: memref<1x32xf32, #tpu.memory_space<vmem>>) attributes {dimension_semantics = [#tpu.dimension_semantics<parallel>], iteration_bounds = array<i64: 1>, scalar_prefetch = 0 : i64, scratch_operands = 0 : i64, tpu.core_type = #tpu.core_type<tc>, window_params = [{transform_indices = @transform_0, window_bounds = array<i64: 1, 9, 32>}, {transform_indices = @transform_1, window_bounds = array<i64: 1, 17, 32>}, {pipeline_mode = #tpu.pipeline_mode<synchronous>, transform_indices = @transform_2, window_bounds = array<i64: 32, 34>}, {pipeline_mode = #tpu.pipeline_mode<synchronous>, transform_indices = @transform_3, window_bounds = array<i64: 32, 34>}, {pipeline_mode = #tpu.pipeline_mode<synchronous>, transform_indices = @transform_4, window_bounds = array<i64: 1, 32>}, {pipeline_mode = #tpu.pipeline_mode<synchronous>, transform_indices = @transform_5, window_bounds = array<i64: 1, 3>}, {transform_indices = @transform_6, window_bounds = array<i64: 1, 32>}]} {
    %c0 = arith.constant 0 : index
    %c0_0 = arith.constant 0 : index
    %0 = vector.load %arg3[%c0, %c0_0] : memref<32x34xf32, #tpu.memory_space<vmem>>, vector<32x34xf32>
    %c0_1 = arith.constant 0 : index
    %c0_2 = arith.constant 0 : index
    %1 = vector.load %arg4[%c0_1, %c0_2] : memref<32x34xf32, #tpu.memory_space<vmem>>, vector<32x34xf32>
    %c0_3 = arith.constant 0 : index
    %c0_4 = arith.constant 0 : index
    %2 = vector.load %arg5[%c0_3, %c0_4] : memref<1x32xf32, #tpu.memory_space<vmem>>, vector<1x32xf32>
    %c0_5 = arith.constant 0 : index
    %c0_6 = arith.constant 0 : index
    %3 = vector.load %arg6[%c0_5, %c0_6] : memref<1x3xf32, #tpu.memory_space<vmem>>, vector<1x3xf32>
    %c0_7 = arith.constant 0 : index
    %c0_8 = arith.constant 0 : index
    %c0_9 = arith.constant 0 : index
    %4 = vector.load %arg1[%c0_7, %c0_8, %c0_9] : memref<1x9x32xf32, #tpu.memory_space<vmem>>, vector<1x9x32xf32>
    %5 = vector.shape_cast %4 : vector<1x9x32xf32> to vector<9x32xf32>
    %c0_10 = arith.constant 0 : index
    %c0_11 = arith.constant 0 : index
    %c0_12 = arith.constant 0 : index
    %6 = vector.load %arg2[%c0_10, %c0_11, %c0_12] : memref<1x17x32xf32, #tpu.memory_space<vmem>>, vector<1x17x32xf32>
    %7 = vector.shape_cast %6 : vector<1x17x32xf32> to vector<17x32xf32>
    %8 = vector.extract_strided_slice %5 {offsets = [8, 0], sizes = [1, 32], strides = [1, 1]} : vector<9x32xf32> to vector<1x32xf32>
    %cst = arith.constant dense<0.000000e+00> : vector<9x34xf32>
    %9 = tpu.matmul %5, %0, %cst {dimension_numbers = #tpu.dot_dimension_numbers<[1], [0], [0], [1], [0, 0, 1, 1], [], []>} : vector<9x32xf32>, vector<32x34xf32>, vector<9x34xf32> -> vector<9x34xf32>
    %10 = vector.extract_strided_slice %9 {offsets = [0, 0], sizes = [8, 32], strides = [1, 1]} : vector<9x34xf32> to vector<8x32xf32>
    %11 = vector.extract_strided_slice %9 {offsets = [8, 32], sizes = [1, 1], strides = [1, 1]} : vector<9x34xf32> to vector<1x1xf32>
    %12 = vector.extract_strided_slice %9 {offsets = [0, 33], sizes = [8, 1], strides = [1, 1]} : vector<9x34xf32> to vector<8x1xf32>
    %13 = vector.broadcast %11 : vector<1x1xf32> to vector<8x1xf32>
    %14 = arith.addf %13, %12 : vector<8x1xf32>
    %cst_13 = arith.constant 0.000000e+00 : f32
    %15 = vector.broadcast %cst_13 : f32 to vector<8x1xf32>
    %16 = arith.cmpf ogt, %14, %15 : vector<8x1xf32>
    %cst_14 = arith.constant 2.000000e-01 : f32
    %17 = vector.broadcast %cst_14 : f32 to vector<8x1xf32>
    %18 = arith.mulf %17, %14 : vector<8x1xf32>
    %19 = arith.select %16, %14, %18 : vector<8x1xi1>, vector<8x1xf32>
    %cst_15 = arith.constant dense<0xFF800000> : vector<1xf32>
    %20 = vector.multi_reduction <maximumf>, %19, %cst_15 [0] : vector<8x1xf32> to vector<1xf32>
    %21 = vector.shape_cast %20 : vector<1xf32> to vector<1x1xf32>
    %22 = vector.broadcast %21 : vector<1x1xf32> to vector<8x1xf32>
    %23 = arith.subf %19, %22 : vector<8x1xf32>
    %24 = math.exp %23 : vector<8x1xf32>
    %cst_16 = arith.constant dense<0.000000e+00> : vector<1xf32>
    %25 = vector.multi_reduction <add>, %24, %cst_16 [0] : vector<8x1xf32> to vector<1xf32>
    %26 = vector.shape_cast %25 : vector<1xf32> to vector<1x1xf32>
    %27 = tpu.reciprocal %26 {approx = true} : vector<1x1xf32> -> vector<1x1xf32>
    %28 = vector.broadcast %27 : vector<1x1xf32> to vector<8x1xf32>
    %29 = arith.mulf %24, %28 : vector<8x1xf32>
    %30 = vector.broadcast %29 : vector<8x1xf32> to vector<8x32xf32>
    %31 = arith.mulf %30, %10 : vector<8x32xf32>
    %cst_17 = arith.constant dense<0.000000e+00> : vector<32xf32>
    %32 = vector.multi_reduction <add>, %31, %cst_17 [0] : vector<8x32xf32> to vector<32xf32>
    %33 = vector.shape_cast %32 : vector<32xf32> to vector<1x32xf32>
    %cst_18 = arith.constant 0.000000e+00 : f32
    %34 = vector.broadcast %cst_18 : f32 to vector<1x32xf32>
    %35 = arith.cmpf ogt, %33, %34 : vector<1x32xf32>
    %cst_19 = arith.constant 0.000000e+00 : f32
    %36 = vector.broadcast %cst_19 : f32 to vector<1x32xf32>
    %37 = arith.minimumf %33, %36 : vector<1x32xf32>
    %38 = math.exp %37 : vector<1x32xf32>
    %cst_20 = arith.constant 1.000000e+00 : f32
    %39 = vector.broadcast %cst_20 : f32 to vector<1x32xf32>
    %40 = arith.subf %38, %39 : vector<1x32xf32>
    %41 = arith.select %35, %33, %40 : vector<1x32xi1>, vector<1x32xf32>
    %cst_21 = arith.constant dense<0.000000e+00> : vector<17x34xf32>
    %42 = tpu.matmul %7, %1, %cst_21 {dimension_numbers = #tpu.dot_dimension_numbers<[1], [0], [0], [1], [0, 0, 1, 1], [], []>} : vector<17x32xf32>, vector<32x34xf32>, vector<17x34xf32> -> vector<17x34xf32>
    %43 = vector.extract_strided_slice %42 {offsets = [0, 0], sizes = [16, 32], strides = [1, 1]} : vector<17x34xf32> to vector<16x32xf32>
    %44 = vector.extract_strided_slice %42 {offsets = [16, 32], sizes = [1, 1], strides = [1, 1]} : vector<17x34xf32> to vector<1x1xf32>
    %45 = vector.extract_strided_slice %42 {offsets = [0, 33], sizes = [16, 1], strides = [1, 1]} : vector<17x34xf32> to vector<16x1xf32>
    %46 = vector.broadcast %44 : vector<1x1xf32> to vector<16x1xf32>
    %47 = arith.addf %46, %45 : vector<16x1xf32>
    %cst_22 = arith.constant 0.000000e+00 : f32
    %48 = vector.broadcast %cst_22 : f32 to vector<16x1xf32>
    %49 = arith.cmpf ogt, %47, %48 : vector<16x1xf32>
    %cst_23 = arith.constant 2.000000e-01 : f32
    %50 = vector.broadcast %cst_23 : f32 to vector<16x1xf32>
    %51 = arith.mulf %50, %47 : vector<16x1xf32>
    %52 = arith.select %49, %47, %51 : vector<16x1xi1>, vector<16x1xf32>
    %cst_24 = arith.constant dense<0xFF800000> : vector<1xf32>
    %53 = vector.multi_reduction <maximumf>, %52, %cst_24 [0] : vector<16x1xf32> to vector<1xf32>
    %54 = vector.shape_cast %53 : vector<1xf32> to vector<1x1xf32>
    %55 = vector.broadcast %54 : vector<1x1xf32> to vector<16x1xf32>
    %56 = arith.subf %52, %55 : vector<16x1xf32>
    %57 = math.exp %56 : vector<16x1xf32>
    %cst_25 = arith.constant dense<0.000000e+00> : vector<1xf32>
    %58 = vector.multi_reduction <add>, %57, %cst_25 [0] : vector<16x1xf32> to vector<1xf32>
    %59 = vector.shape_cast %58 : vector<1xf32> to vector<1x1xf32>
    %60 = tpu.reciprocal %59 {approx = true} : vector<1x1xf32> -> vector<1x1xf32>
    %61 = vector.broadcast %60 : vector<1x1xf32> to vector<16x1xf32>
    %62 = arith.mulf %57, %61 : vector<16x1xf32>
    %63 = vector.broadcast %62 : vector<16x1xf32> to vector<16x32xf32>
    %64 = arith.mulf %63, %43 : vector<16x32xf32>
    %cst_26 = arith.constant dense<0.000000e+00> : vector<32xf32>
    %65 = vector.multi_reduction <add>, %64, %cst_26 [0] : vector<16x32xf32> to vector<32xf32>
    %66 = vector.shape_cast %65 : vector<32xf32> to vector<1x32xf32>
    %cst_27 = arith.constant 0.000000e+00 : f32
    %67 = vector.broadcast %cst_27 : f32 to vector<1x32xf32>
    %68 = arith.cmpf ogt, %66, %67 : vector<1x32xf32>
    %cst_28 = arith.constant 0.000000e+00 : f32
    %69 = vector.broadcast %cst_28 : f32 to vector<1x32xf32>
    %70 = arith.minimumf %66, %69 : vector<1x32xf32>
    %71 = math.exp %70 : vector<1x32xf32>
    %cst_29 = arith.constant 1.000000e+00 : f32
    %72 = vector.broadcast %cst_29 : f32 to vector<1x32xf32>
    %73 = arith.subf %71, %72 : vector<1x32xf32>
    %74 = arith.select %68, %66, %73 : vector<1x32xi1>, vector<1x32xf32>
    %75 = arith.mulf %2, %41 : vector<1x32xf32>
    %cst_30 = arith.constant dense<0.000000e+00> : vector<1xf32>
    %76 = vector.multi_reduction <add>, %75, %cst_30 [1] : vector<1x32xf32> to vector<1xf32>
    %77 = vector.shape_cast %76 : vector<1xf32> to vector<1x1xf32>
    %78 = vector.extract_strided_slice %3 {offsets = [0, 0], sizes = [1, 1], strides = [1, 1]} : vector<1x3xf32> to vector<1x1xf32>
    %79 = arith.addf %77, %78 : vector<1x1xf32>
    %80 = arith.mulf %2, %74 : vector<1x32xf32>
    %cst_31 = arith.constant dense<0.000000e+00> : vector<1xf32>
    %81 = vector.multi_reduction <add>, %80, %cst_31 [1] : vector<1x32xf32> to vector<1xf32>
    %82 = vector.shape_cast %81 : vector<1xf32> to vector<1x1xf32>
    %83 = vector.extract_strided_slice %3 {offsets = [0, 1], sizes = [1, 1], strides = [1, 1]} : vector<1x3xf32> to vector<1x1xf32>
    %84 = arith.addf %82, %83 : vector<1x1xf32>
    %85 = arith.mulf %2, %8 : vector<1x32xf32>
    %cst_32 = arith.constant dense<0.000000e+00> : vector<1xf32>
    %86 = vector.multi_reduction <add>, %85, %cst_32 [1] : vector<1x32xf32> to vector<1xf32>
    %87 = vector.shape_cast %86 : vector<1xf32> to vector<1x1xf32>
    %88 = vector.extract_strided_slice %3 {offsets = [0, 2], sizes = [1, 1], strides = [1, 1]} : vector<1x3xf32> to vector<1x1xf32>
    %89 = arith.addf %87, %88 : vector<1x1xf32>
    %90 = arith.maximumf %79, %84 : vector<1x1xf32>
    %91 = arith.maximumf %90, %89 : vector<1x1xf32>
    %92 = arith.subf %79, %91 : vector<1x1xf32>
    %93 = math.exp %92 : vector<1x1xf32>
    %94 = arith.subf %84, %91 : vector<1x1xf32>
    %95 = math.exp %94 : vector<1x1xf32>
    %96 = arith.subf %89, %91 : vector<1x1xf32>
    %97 = math.exp %96 : vector<1x1xf32>
    %98 = arith.addf %93, %95 : vector<1x1xf32>
    %99 = arith.addf %98, %97 : vector<1x1xf32>
    %100 = tpu.reciprocal %99 {approx = true} : vector<1x1xf32> -> vector<1x1xf32>
    %101 = arith.mulf %97, %100 : vector<1x1xf32>
    %102 = vector.broadcast %101 : vector<1x1xf32> to vector<1x32xf32>
    %103 = arith.mulf %102, %8 : vector<1x32xf32>
    %104 = arith.mulf %93, %100 : vector<1x1xf32>
    %105 = vector.broadcast %104 : vector<1x1xf32> to vector<1x32xf32>
    %106 = arith.mulf %105, %41 : vector<1x32xf32>
    %107 = arith.addf %103, %106 : vector<1x32xf32>
    %108 = arith.mulf %95, %100 : vector<1x1xf32>
    %109 = vector.broadcast %108 : vector<1x1xf32> to vector<1x32xf32>
    %110 = arith.mulf %109, %74 : vector<1x32xf32>
    %111 = arith.addf %107, %110 : vector<1x32xf32>
    %c0_33 = arith.constant 0 : index
    %c0_34 = arith.constant 0 : index
    %112 = vector.load %arg7[%c0_33, %c0_34] : memref<1x32xf32, #tpu.memory_space<vmem>>, vector<1x32xf32>
    tpu.vector_store %arg7[%c0_33, %c0_34], %111 {strides = array<i32>} : memref<1x32xf32, #tpu.memory_space<vmem>>, vector<1x32xf32>,
    return
  }
  func.func @transform_0(%arg0: i32) -> (i32, i32, i32) {
    %c0_i32 = arith.constant 0 : i32
    %c0_i32_0 = arith.constant 0 : i32
    %c0_i32_1 = arith.constant 0 : i32
    return %arg0, %c0_i32, %c0_i32_0 : i32, i32, i32
  }
  func.func @transform_1(%arg0: i32) -> (i32, i32, i32) {
    %c0_i32 = arith.constant 0 : i32
    %c0_i32_0 = arith.constant 0 : i32
    %c0_i32_1 = arith.constant 0 : i32
    return %arg0, %c0_i32, %c0_i32_0 : i32, i32, i32
  }
  func.func @transform_2(%arg0: i32) -> (i32, i32) {
    %c0_i32 = arith.constant 0 : i32
    %c0_i32_0 = arith.constant 0 : i32
    %c0_i32_1 = arith.constant 0 : i32
    return %c0_i32, %c0_i32_0 : i32, i32
  }
  func.func @transform_3(%arg0: i32) -> (i32, i32) {
    %c0_i32 = arith.constant 0 : i32
    %c0_i32_0 = arith.constant 0 : i32
    %c0_i32_1 = arith.constant 0 : i32
    return %c0_i32, %c0_i32_0 : i32, i32
  }
  func.func @transform_4(%arg0: i32) -> (i32, i32) {
    %c0_i32 = arith.constant 0 : i32
    %c0_i32_0 = arith.constant 0 : i32
    %c0_i32_1 = arith.constant 0 : i32
    return %c0_i32, %c0_i32_0 : i32, i32
  }
  func.func @transform_5(%arg0: i32) -> (i32, i32) {
    %c0_i32 = arith.constant 0 : i32
    %c0_i32_0 = arith.constant 0 : i32
    %c0_i32_1 = arith.constant 0 : i32
    return %c0_i32, %c0_i32_0 : i32, i32
  }
  func.func @transform_6(%arg0: i32) -> (i32, i32) {
    %c0_i32 = arith.constant 0 : i32
    %c0_i32_0 = arith.constant 0 : i32
    return %arg0, %c0_i32 : i32, i32
  }
}

</mosaic_0001>

<bundles_post_ra>
// kernel: fedhe_forward.1
= control target key start
LH: loop header
LB: loop body
LE: loop exit
PB: predicated region body
PF: predicated region fallthrough
CT: control target
= control target key end

     0   :  { %v534_v3 = vmov 0.0|0.0   ;;  %vm535_vm0 = vmmov 0   ;;  %v536_v8 = vmov 0.0   ;;  %vm39_vm1 = vcmask 261120   ;;  %s681_s0 = inlined_call_operand.vmem [shape: f32[1,9,32], index: 0, kind: input, shape index: {}]   ;;  %s682_s1 = inlined_call_operand.vmem [shape: f32[1,17,32], index: 1, kind: input, shape index: {}]   ;;  %s683_s2 = inlined_call_operand.vmem [shape: f32[32,34], index: 2, kind: input, shape index: {}]   ;;  %s684_s3 = inlined_call_operand.vmem [shape: f32[32,34], index: 3, kind: input, shape index: {}]   ;;  %s685_s4 = inlined_call_operand.vmem [shape: f32[1,32], index: 4, kind: input, shape index: {}]   ;;  %s686_s5 = inlined_call_operand.vmem [shape: f32[1,3], index: 5, kind: input, shape index: {}]   ;;  %s687_s6 = inlined_call_operand.hbm [shape: f32[1,32], index: 6, kind: output, shape index: {}]  }
   0x1   :  { %v24_v0 = vld [vmem:[%s683_s2] sm:$0xff]  ;;  %v25_v1 = vld [vmem:[%s683_s2 + $0x8] sm:$0xff]  ;;  %470 = vmatprep.subr.bf16.mxu1 %v534_v3  ;;  %v26_v6 = vld [vmem:[%s683_s2 + $0x10] sm:$0xff]  ;;  %453 = vmatprep.mubr.msk.f32.mxu1 %vm535_vm0, %v536_v8 }
   0x2   :  { %v28_v2 = vld [vmem:[%s684_s3] sm:$0xff]  ;;  %v462_v4 = vpack.c.bf16 %v25_v1, %v24_v0  ;;  %v29_v5 = vld [vmem:[%s684_s3 + $0x8] sm:$0xff]  ;;  %v27_v7 = vld [vmem:[%s683_s2 + $0x18] sm:$0xff] }
   0x3   :  { %v471_v9 = vpack.c.bf16 %v29_v5, %v28_v2  ;;  %v466_v10 = vpack.c.bf16 %v27_v7, %v26_v6  ;;  %v30_v11 = vld [vmem:[%s684_s3 + $0x10] sm:$0xff]  ;;  %v31_v12 = vld [vmem:[%s684_s3 + $0x18] sm:$0xff]  ;;  %v34_v13 = vld [vmem:[%s681_s0] sm:$0xff] }
   0x4   :  { %463 = vmatprep.subr.bf16.mxu0 %v462_v4  ;;  %442 = vmatprep.mubr.msk.f32.mxu0 %vm39_vm1, %v34_v13  ;;  %v474_v14 = vpack.c.bf16 %v31_v12, %v30_v11 }
   0x5   :  { %472 = vmatpush3.bf16.msra.mxu1 %v471_v9  ;;  %465 = vmatpush3.bf16.msra.mxu0 %v462_v4 }
   0x6   :  { %11 = vsyncpa [#allocation3], 0  ;;  %473 = vmatprep.subr.bf16.mxu1 %v534_v3  ;;  %467 = vmatprep.subr.bf16.mxu0 %v466_v10  ;;  %v36_v15 = vld [vmem:[%s682_s1] sm:$0xff]  ;;  %v612_v16 = vld [vmem:[%s681_s0 + $0x8] sm:$0x1]  ;;  %s537_s0 = smov 127   ;;  %v121_v28 = vlaneseq }
   0x7   :  { %v37_v17 = vld [vmem:[%s682_s1 + $0x8] sm:$0xff]  ;;  %v38_v18 = vld [vmem:[%s682_s1 + $0x10] sm:$0x1]  ;;  %v538_v27 = vmov 32   ;;  %vm133_vm4 = vcmask 269568   ;;  %vm336_vm6 = vcmask 253952  }
   0x8   :  { %485 = vset.pattern.permute.xlu0 %v538_v27  ;;  %484 = vset.pattern.permute.xlu1 %v538_v27  ;;  %v122_v29 = vshrl.u32 %v121_v28, 7  ;;  %s539_s23 = smov 126  }
   0x9   :  { %475 = vmatpush3.bf16.msra.mxu1 %v474_v14  ;;  %469 = vmatpush3.bf16.msra.mxu0 %v466_v10 }
   0xa   :  { %v639_v30 = vsub.s32 0, %v122_v29 }
   0xc   :  { %454 = vmatmul.mubr.msk.f32.vlgmr.msra.gmra.mrb[0].mxu1 %vm39_vm1, %v36_v15  ;;  %443 = vmatmul.mubr.msk.f32.vlgmr.msra.gmra.mrb[0].mxu0 %vm39_vm1, %v612_v16 }
   0xd   :  { %456 = vmatprep.mubr.msk.f32.mxu1 %vm535_vm0, %v536_v8 }
  0x10   :  { %457 = vmatmul.mubr.msk.f32.gmra.mrb[2].mxu1 %vm39_vm1, %v37_v17 }
  0x11   :  { %459 = vmatprep.mubr.msk.f32.mxu1 %vm535_vm0, %v536_v8 }
  0x14   :  { %460 = vmatmul.mubr.msk.f32.gmra.mrb[4].mxu1 %vm39_vm1, %v38_v18 }
  0xdf   :  { %v627_v19 = vpop.f32.mrb[0].mxu1  ;;  %v444_v20 = vpop.f32.mrb[0].mxu0 }
  0xe0   :  { %267 = vrot.lane.b32.xlu0 %v627_v19, %s537_s0  ;;  %v455_v21 = vpop.f32.mrb[1].mxu1  ;;  %v631_v22 = vpop.f32.mrb[1].mxu0  ;;  %v124_v32 = vrot.slane %v444_v20, %v639_v30 }
  0xe1   :  { %126 = vrot.lane.b32.xlu1 %v631_v22, %s537_s0 }
  0xe3   :  { %v635_v23 = vpop.f32.mrb[2].mxu1 }
  0xe4   :  { %269 = vrot.lane.b32.xlu0 %v635_v23, %s537_s0  ;;  %v458_v24 = vpop.f32.mrb[3].mxu1 }
  0xe7   :  { %v257_v25 = vpop.f32.mrb[4].mxu1 }
  0xe8   :  { %v461_v26 = vpop.f32.mrb[5].mxu1  ;;  %v264_v31 = vrot.slane %v257_v25, %v639_v30 }
 0x152   :  { %v268_v33 = vpop.permute.xlu0 %267 }
 0x153   :  { %v273_v34 = vadd.f32 %v268_v33, %v264_v31  ;;  %v127_v35 = vpop.permute.xlu1 %126 }
 0x154   :  { %v129_v36 = vadd.f32 %v127_v35, %v124_v32  ;;  %v32_v32 = vld [vmem:[%s685_s4] sm:$0x1] }
 0x155   :  { %v277_v37 = vmul.f32 0.2, %v273_v34  ;;  %vm275_vm2 = vcmp.gt.f32.partialorder %v273_v34, 0.0  ;;  %v354_v33 = vmul.f32 %v612_v16, %v32_v32 }
 0x156   :  { %vm130_vm3 = vcmp.gt.f32.partialorder %v129_v36, 0.0  ;;  %v131_v38 = vmul.f32 0.2, %v129_v36  ;;  %v270_v39 = vpop.permute.xlu0 %269 }
 0x157   :  { %v274_v40 = vadd.f32 %v270_v39, %v264_v31  ;;  %v279_v42 = vsel %vm275_vm2, %v273_v34, %v277_v37  ;;  %v355_v34 = vsel %vm336_vm6, %v354_v33, 0.0 }
 0x158   :  { %v132_v41 = vsel %vm130_vm3, %v129_v36, %v131_v38  ;;  %v281_v47 = vsel %vm133_vm4, %v279_v42, -inf }
 0x159   :  { %v134_v43 = vsel %vm133_vm4, %v132_v41, -inf  ;;  %vm276_vm5 = vcmp.gt.f32.partialorder %v274_v40, 0.0  ;;  %v278_v44 = vmul.f32 0.2, %v274_v40 }
 0x15a   :  { %v135_v45 = vrot.slane %v134_v43, 4 }
 0x15b   :  { %v280_v46 = vsel %vm276_vm5, %v274_v40, %v278_v44 }
 0x15c   :  { %v136_v48 = vmax.f32 %v134_v43, %v135_v45  ;;  %v282_v49 = vsel %vm133_vm4, %v280_v46, -inf }
 0x15d   :  { %v283_v50 = vmax.f32 %v281_v47, %v282_v49 }
 0x15e   :  { %v137_v51 = vrot.slane %v136_v48, 2 }
 0x15f   :  { %v284_v52 = vrot.slane %v283_v50, 4 }
 0x160   :  { %v138_v53 = vmax.f32 %v136_v48, %v137_v51 }
 0x161   :  { %v285_v54 = vmax.f32 %v283_v50, %v284_v52 }
 0x162   :  { %v139_v55 = vrot.slane %v138_v53, 1 }
 0x163   :  { %v286_v56 = vrot.slane %v285_v54, 2 }
 0x164   :  { %v140_v57 = vmax.f32 %v138_v53, %v139_v55 }
 0x165   :  { %v287_v58 = vmax.f32 %v285_v54, %v286_v56 }
 0x166   :  { %v141_v59 = vsub.f32 %v132_v41, %v140_v57 }
 0x167   :  { %v288_v60 = vrot.slane %v287_v58, 1 }
 0x168   :  { %v142_v61 = vmul.f32 1.442695, %v141_v59 }
 0x169   :  { %v289_v62 = vmax.f32 %v287_v58, %v288_v60 }
 0x16a   :  { %488 = vpow2.f32 %v142_v61 }
 0x16b   :  { %v290_v63 = vsub.f32 %v279_v42, %v289_v62  ;;  %v291_v0 = vsub.f32 %v280_v46, %v289_v62 }
 0x16d   :  { %v292_v1 = vmul.f32 1.442695, %v290_v63  ;;  %v294_v2 = vmul.f32 1.442695, %v291_v0 }
 0x16f   :  { %490 = vpow2.f32 %v292_v1 }
 0x170   :  { %492 = vpow2.f32 %v294_v2 }
 0x174   :  { %v489_v3 = vpop.eup %488 }
 0x175   :  { %v144_v4 = vsel %vm133_vm4, %v489_v3, 0.0 }
 0x176   :  { %v145_v5 = vrot.slane %v144_v4, 4 }
 0x178   :  { %v146_v6 = vadd.f32 %v145_v5, %v144_v4  ;;  %v33_v4 = vld [vmem:[%s686_s5] sm:$0x1]  ;;  %s541_s5 = smov [#allocation2]  }
 0x179   :  { %v491_v7 = vpop.eup %490  ;;  %v349_v5 = vrot.slane %v33_v4, %v639_v30  ;;  %s406_s24 = sshll.u32 %s541_s5, 4  ;;  %s407_s24 = int_to_ptr.vmem [resolvable:$true] %s406_s24 }
 0x17a   :  { %v493_v8 = vpop.eup %492  ;;  %v296_v9 = vsel %vm133_vm4, %v491_v7, 0.0  ;;  %v147_v12 = vrot.slane %v146_v6, 2  ;;  %s510_s25 = scalar_lea.vmem %s407_s24, 16  ;;  %s514_s26 = scalar_lea.vmem %s407_s24, 32 }
 0x17b   :  { %v297_v10 = vsel %vm133_vm4, %v493_v8, 0.0  ;;  %p511_p0 = scmp.ne.s32.totalorder %s407_s24, %s510_s25  ;;  %p515_p1 = scmp.lt.s32.totalorder %s407_s24, %s407_s24 }
 0x17c   :  { %v298_v11 = vadd.f32 %v297_v10, %v296_v9  ;;  %v148_v15 = vadd.f32 %v147_v12, %v146_v6  ;;  %v540_v6 = vmov 0   ;;  %p516_p2 = scmp.lt.s32.totalorder %s514_s26, %s510_s25 }
 0x17e   :  { %v299_v13 = vrot.slane %v298_v11, 4  ;;  %v149_v20 = vrot.slane %v148_v15, 1  ;;  %p517_p3 = por %p516_p2, %p515_p1 }
 0x180   :  { %v300_v14 = vadd.f32 %v299_v13, %v298_v11  ;;  %v150_v25 = vadd.f32 %v149_v20, %v148_v15  ;;  %p518_p4 = pnand %p517_p3, %p511_p0 }
 0x182   :  { %v301_v17 = vrot.slane %v300_v14, 2 }
 0x184   :  { %v302_v18 = vadd.f32 %v301_v17, %v300_v14 }
 0x186   :  { %v303_v21 = vrot.slane %v302_v18, 1 }
 0x188   :  { %v304_v24 = vadd.f32 %v303_v21, %v302_v18 }
 0x18a   :  { %494 = vrcp.f32 %v304_v24 }
 0x18b   :  { %496 = vrcp.f32 %v150_v25 }
 0x194   :  { %v495_v26 = vpop.eup %494 }
 0x195   :  { %v307_v27 = vmul.f32 %v495_v26, %v493_v8  ;;  %v306_v28 = vmul.f32 %v495_v26, %v491_v7  ;;  %v497_v29 = vpop.eup %496 }
 0x196   :  { %v152_v31 = vmul.f32 %v497_v29, %v489_v3 }
 0x197   :  { %315 = vperm.xlu0 %485, %v307_v27   ;;  %310 = vperm.xlu1 %484, %v306_v28  }
 0x19b   :  { %155 = vperm.xlu1 %484, %v152_v31   ;;  %487 = vset.pattern.permute.xlu0 %v540_v6 }
 0x19f   :  { %486 = vset.pattern.permute.xlu1 %v540_v6 }
 0x1b6   :  { %356 = vadd.xlane.f32.xlu0 %v355_v34 }
 0x216   :  { %v316_v35 = vpop.permute.xlu0 %315  ;;  %v311_v36 = vpop.permute.xlu1 %310 }
 0x217   :  { %v319_v37 = vmul.f32 %v316_v35, %v635_v23  ;;  %v318_v38 = vmul.f32 %v311_v36, %v627_v19 }
 0x219   :  { %v321_v39 = vsel %vm39_vm1, %v319_v37, 0.0  ;;  %v320_v40 = vsel %vm39_vm1, %v318_v38, 0.0 }
 0x21a   :  { %v322_v41 = vadd.f32 %v321_v39, %v320_v40  ;;  %v156_v42 = vpop.permute.xlu1 %155 }
 0x21b   :  { %v158_v43 = vmul.f32 %v156_v42, %v631_v22 }
 0x21c   :  { %v323_v44 = vrot.slane %v322_v41, 4 }
 0x21d   :  { %v159_v45 = vsel %vm39_vm1, %v158_v43, 0.0 }
 0x21e   :  { %v324_v46 = vadd.f32 %v323_v44, %v322_v41  ;;  %v160_v47 = vrot.slane %v159_v45, 4 }
 0x220   :  { %v325_v48 = vrot.slane %v324_v46, 2  ;;  %v161_v49 = vadd.f32 %v160_v47, %v159_v45 }
 0x222   :  { %v326_v50 = vadd.f32 %v325_v48, %v324_v46  ;;  %v162_v51 = vrot.slane %v161_v49, 2 }
 0x224   :  { %v327_v23 = vrot.slane %v326_v50, 1  ;;  %v163_v52 = vadd.f32 %v162_v51, %v161_v49 }
 0x226   :  { %v164_v19 = vrot.slane %v163_v52, 1  ;;  %v328_v53 = vadd.f32 %v327_v23, %v326_v50 }
 0x228   :  { %v165_v54 = vadd.f32 %v164_v19, %v163_v52  ;;  %v330_v55 = vmin.f32 %v328_v53, 0.0  ;;  %vm329_vm7 = vcmp.gt.f32.partialorder %v328_v53, 0.0 }
 0x22a   :  { %v331_v56 = vmul.f32 1.442695, %v330_v55  ;;  %v167_v57 = vmin.f32 %v165_v54, 0.0  ;;  %vm166_vm8 = vcmp.gt.f32.partialorder %v165_v54, 0.0 }
 0x22c   :  { %498 = vpow2.f32 %v331_v56  ;;  %v168_v58 = vmul.f32 1.442695, %v167_v57 }
 0x22e   :  { %500 = vpow2.f32 %v168_v58 }
 0x236   :  { %v499_v22 = vpop.eup %498 }
 0x237   :  { %v420_v59 = vadd.f32 -1.0, %v499_v22 }
 0x238   :  { %v501_v60 = vpop.eup %500 }
 0x239   :  { %v334_v61 = vsel %vm329_vm7, %v328_v53, %v420_v59  ;;  %v416_v62 = vadd.f32 -1.0, %v501_v60 }
 0x23a   :  { %v341_v63 = vmul.f32 %v334_v61, %v32_v32 }
 0x23b   :  { %v171_v0 = vsel %vm166_vm8, %v165_v54, %v416_v62 }
 0x23c   :  { %v342_v1 = vsel %vm336_vm6, %v341_v63, 0.0  ;;  %v335_v2 = vmul.f32 %v171_v0, %v32_v32 }
 0x23d   :  { %343 = vadd.xlane.f32.xlu0 %v342_v1 }
 0x23e   :  { %v337_v3 = vsel %vm336_vm6, %v335_v2, 0.0 }
 0x23f   :  { %338 = vadd.xlane.f32.xlu1 %v337_v3 }
 0x243   :  { %v357_v7 = vpop.xlane.xlu0 %356 }
 0x250   :  { %350 = vrot.lane.b32.xlu1 %v349_v5, %s537_s0 }
 0x253   :  { %358 = vrot.lane.b32.xlu0 %v349_v5, %s539_s23 }
 0x2ca   :  { %v344_v8 = vpop.xlane.xlu0 %343 }
 0x2cc   :  { %v339_v9 = vpop.xlane.xlu1 %338 }
 0x2cd   :  { %v340_v12 = vadd.f32 %v339_v9, %v33_v4 }
 0x2ce   :  { %v359_v10 = vpop.permute.xlu0 %358 }
 0x2cf   :  { %v361_v14 = vadd.f32 %v359_v10, %v357_v7 }
 0x2d0   :  { %v351_v11 = vpop.permute.xlu1 %350 }
 0x2d1   :  { %v353_v13 = vadd.f32 %v351_v11, %v344_v8 }
 0x2d3   :  { %v362_v15 = vmax.f32 %v340_v12, %v353_v13 }
 0x2d5   :  { %v363_v17 = vmax.f32 %v362_v15, %v361_v14 }
 0x2d7   :  { %v364_v18 = vsub.f32 %v340_v12, %v363_v17  ;;  %v367_v20 = vsub.f32 %v353_v13, %v363_v17  ;;  %v370_v30 = vsub.f32 %v361_v14, %v363_v17 }
 0x2d9   :  { %v365_v21 = vmul.f32 1.442695, %v364_v18  ;;  %v368_v24 = vmul.f32 1.442695, %v367_v20  ;;  %v371_v25 = vmul.f32 1.442695, %v370_v30 }
 0x2db   :  { %502 = vpow2.f32 %v365_v21 }
 0x2dc   :  { %504 = vpow2.f32 %v368_v24 }
 0x2dd   :  { %506 = vpow2.f32 %v371_v25 }
 0x2e5   :  { %v503_v26 = vpop.eup %502 }
 0x2e6   :  { %v505_v27 = vpop.eup %504 }
 0x2e7   :  { %v373_v28 = vadd.f32 %v505_v27, %v503_v26  ;;  %v507_v29 = vpop.eup %506 }
 0x2e9   :  { %v374_v31 = vadd.f32 %v507_v29, %v373_v28 }
 0x2eb   :  { %508 = vrcp.f32 %v374_v31 }
 0x2f5   :  { %v509_v32 = vpop.eup %508 }
 0x2f6   :  { %v391_v33 = vmul.f32 %v509_v32, %v505_v27  ;;  %v376_v34 = vmul.f32 %v509_v32, %v507_v29  ;;  %v383_v35 = vmul.f32 %v509_v32, %v503_v26 }
 0x2f8   :  { %394 = vperm.xlu0 %487, %v391_v33   ;;  %379 = vperm.xlu1 %486, %v376_v34  }
 0x2fc   :  { %386 = vperm.xlu1 %486, %v383_v35  }
 0x377   :  { %v380_v36 = vpop.permute.xlu1 %379  ;;  %v395_v37 = vpop.permute.xlu0 %394 }
 0x378   :  { %v382_v39 = vmul.f32 %v380_v36, %v612_v16  ;;  %v397_v41 = vmul.f32 %v395_v37, %v334_v61 }
 0x37b   :  { %v387_v38 = vpop.permute.xlu1 %386 }
 0x37c   :  { %v389_v40 = vmul.f32 %v387_v38, %v171_v0 }
 0x37e   :  { %v390_v42 = vadd.f32 %v389_v40, %v382_v39 }
 0x380   :  { %v398_v43 = vadd.f32 %v397_v41, %v390_v42 }
 0x382   :  { %399 = vst.msk [vmem:[#allocation2] sm:$0x1] %vm336_vm6, %v398_v43 }
 0x383   :  { %521 = shalt.err (!%p518_p4)
}
 0x384   :  { %s522_s29 = scalar_lea.hbm %s687_s6, 16 }
 0x385   :  { %p523_p5 = scmp.ne.s32.totalorder %s687_s6, %s522_s29  ;;  %p526_p6 = scmp.lt.u32.totalorder %s522_s29, %s687_s6 }
 0x387   :  { %p528_p7 = pnand %p526_p6, %p523_p5 }
 0x389   :  { %531 = shalt.err (!%p528_p7)
}
 0x38a   :  { %409 = dma.vmem_to_hbm [thread:$0]  %s407_s24, 16, %s687_s6, [#allocation3]  }
 0x38b   :  { %532 = dma.done.wait [#allocation3], 16  }
 0x38c   :  { %533 = vsyncadd [#allocation3], 4294967280 }
 0x38d   :  { %413 = vsyncpa [#allocation3], 1 }

</bundles_post_ra>
